<compile_context>
chip_gen: v6e
topology: v6e:2x2x1
jax: 0.10.0
libtpu: 0.0.40
codegen_flags: <defaults>
</compile_context>

<pallas_src>
import jax
import jax.numpy as jnp
from jax.experimental import pallas as pl
from jax.experimental.pallas import tpu as pltpu


def _round_up(x, m):
    return (x + m - 1) // m * m


# ---------------------------------------------------------------------------
# Fused kernel: GRU step (once, at j == 0) + vocab-tiled output projection
# ---------------------------------------------------------------------------
def decoder_step_kernel(emb_con_ref, h_ref,
                        w_i_ref, w_h_ref, b_i_ref, b_h_ref,
                        w_fc_ref, b_fc_ref,
                        pred_ref, h_new_ref,
                        x_cat_s):
    """Fused decoder step.

    Grid axis 0 streams (K, TILE_O) bf16 tiles of the output-projection weight.
    The GRU cell + construction of x_cat = [emb | ctx | h_new] (fc weight rows are
    pre-permuted to this layout) run once under pl.when(j == 0); x_cat persists in
    VMEM scratch across all vocab tiles.
    """
    j = pl.program_id(0)
    eh = emb_con_ref.shape[1]             # E + H
    hp = h_ref.shape[1]                   # per-gate width (H rounded up to 128)
    hid = w_fc_ref.shape[0] - eh          # true H

    @pl.when(j == 0)
    def _():
        x = emb_con_ref[...]                                        # (B_pad, E+H) f32
        h = h_ref[...]                                              # (B_pad, Hp)  f32
        # Two stacked matmuls instead of six gate-separated ones; gate blocks are
        # lane-aligned (each padded to hp = multiple of 128 lanes).
        gi = jnp.dot(x, w_i_ref[...],
                     preferred_element_type=jnp.float32) + b_i_ref[...]
        gh = jnp.dot(h, w_h_ref[...],
                     preferred_element_type=jnp.float32) + b_h_ref[...]
        # PyTorch GRU: r = sig(gi_r+gh_r), z = sig(gi_z+gh_z), n = tanh(gi_n + r*gh_n)
        r = jax.nn.sigmoid(gi[:, 0:hp] + gh[:, 0:hp])
        z = jax.nn.sigmoid(gi[:, hp:2 * hp] + gh[:, hp:2 * hp])
        n = jnp.tanh(gi[:, 2 * hp:3 * hp] + r * gh[:, 2 * hp:3 * hp])
        h_new = (1.0 - z) * n + z * h                               # (B_pad, Hp)
        h_new_ref[...] = h_new
        # x_cat = [emb | ctx | h_new]  (bf16, feeds the MXU-native fc matmul).
        x_cat_s[...] = jnp.concatenate([x, h_new[:, 0:hid]],
                                       axis=1).astype(x_cat_s.dtype)

    # One vocab tile of the projection: (B_pad, K) @ (K, TILE_O) + bias.
    pred_ref[...] = (jnp.dot(x_cat_s[...], w_fc_ref[...],
                             preferred_element_type=jnp.float32)
                     + b_fc_ref[...])


# ---------------------------------------------------------------------------
# Wrapper
# ---------------------------------------------------------------------------
def decoder_forward(token_ids, hidden, context, params):
    """token_ids: (B,) int32; hidden/context: (1, B, H) f32.
    Returns (pred (B, O), hidden (1, B, H))."""
    B = token_ids.shape[0]
    E = params["emb_dim"]
    H = params["hid_dim"]
    Hp = params["hid_pad"]
    O = params["output_dim"]
    O_pad = params["o_pad"]
    TILE_O = params["tile_o"]
    K = E + 2 * H
    B_pad = _round_up(max(B, 16), 16)       # 16 rows = one packed bf16 sublane group

    # Embedding lookup (eval-mode dropout = identity) + minimal padding glue.
    # TODO(synk): fuse the gather too (scalar-prefetched token ids + per-row DMA from
    # an ANY-space embedding table) to drop the remaining XLA glue ops.
    emb = jnp.take(params["embedding"], token_ids, axis=0)              # (B, E)
    emb_con = jnp.pad(jnp.concatenate([emb, context[0]], axis=1),
                      ((0, B_pad - B), (0, 0)))                          # (B_pad, E+H)
    h_p = jnp.pad(hidden[0], ((0, B_pad - B), (0, Hp - H)))              # (B_pad, Hp)

    n_tiles = O_pad // TILE_O

    def full(shape):
        return pl.BlockSpec(shape, lambda j: (0,) * len(shape))

    # VMEM footprint -> vmem_limit_bytes (derived, not hard-coded; safe on v7x).
    fc_bytes = (2 * K * TILE_O * 2          # double-buffered bf16 weight tiles
                + 2 * B_pad * TILE_O * 4    # double-buffered f32 output tiles
                + 2 * TILE_O * 4)           # bias tiles
    resident = (B_pad * K * 2                                     # x_cat scratch
                + B_pad * (E + H) * 4 + B_pad * Hp * 4            # activations
                + (E + H) * 3 * Hp * 4 + Hp * 3 * Hp * 4          # GRU weights
                + 2 * 3 * Hp * 4                                  # GRU biases
                + B_pad * Hp * 4)                                 # resident h_new out
    # TODO(synk): for very large hidden sizes the resident GRU weights would need
    # their own tiling; fine for decoder-sized H.
    vmem_limit = int(min(max(2 * (fc_bytes + resident), 16 << 20), 30 << 20))

    cost = pl.CostEstimate(
        flops=2 * B_pad * K * O_pad + 2 * B_pad * (E + H + Hp) * 3 * Hp,
        transcendentals=3 * B_pad * Hp,
        bytes_accessed=K * O_pad * 2 + O_pad * 4 + B_pad * O_pad * 4 + resident,
    )

    pred_full, h_new_full = pl.pallas_call(
        decoder_step_kernel,
        out_shape=(jax.ShapeDtypeStruct((B_pad, O_pad), jnp.float32),
                   jax.ShapeDtypeStruct((B_pad, Hp), jnp.float32)),
        grid=(n_tiles,),
        in_specs=[
            full((B_pad, E + H)),                         # emb_con   (resident)
            full((B_pad, Hp)),                            # hidden    (resident)
            full((E + H, 3 * Hp)),                        # stacked input-gate weights
            full((Hp, 3 * Hp)),                           # stacked hidden-gate weights
            full((1, 3 * Hp)),                            # input-gate bias
            full((1, 3 * Hp)),                            # hidden-gate bias
            pl.BlockSpec((K, TILE_O), lambda j: (0, j)),  # bf16 fc weight stream
            pl.BlockSpec((1, TILE_O), lambda j: (0, j)),  # fc bias stream
        ],
        out_specs=(
            pl.BlockSpec((B_pad, TILE_O), lambda j: (0, j)),  # lane-dense logits tile
            full((B_pad, Hp)),                                # new hidden (resident)
        ),
        scratch_shapes=[pltpu.VMEM((B_pad, K), jnp.bfloat16)],
        compiler_params=pltpu.CompilerParams(
            # "arbitrary", not "parallel": the j==0 setup writes per-core scratch.
            dimension_semantics=("arbitrary",),
            vmem_limit_bytes=vmem_limit,
        ),
        cost_estimate=cost,
    )(emb_con, h_p, params["w_i"], params["w_h"], params["b_i"], params["b_h"],
      params["w_fc"], params["b_fc"])

    # TODO(synk): inside an autoregressive decode loop, carry the padded activations
    # and logits through the loop instead of slicing/re-padding every step.
    pred = pred_full[:B, :O]
    h_out = h_new_full[:B, :H][None, :, :]
    return pred, h_out


# ---------------------------------------------------------------------------
# Parameters (PyTorch layouts -> kernel layouts)
# ---------------------------------------------------------------------------
def _stack_gates(w, hid, hp):
    """(in, 3*hid), gate order [r|z|n] -> (in, 3*hp); each gate zero-padded to hp lanes."""
    out = jnp.zeros((w.shape[0], 3 * hp), w.dtype)
    for g in range(3):
        out = out.at[:, g * hp:g * hp + hid].set(w[:, g * hid:(g + 1) * hid])
    return out


def _choose_fc_tiling(output_dim, k, b_pad=16, budget_bytes=24 * 1024 * 1024):
    """Pick (o_pad, tile_o).  Single block when the whole padded vocab projection fits
    the VMEM budget (avoids per-grid-step overhead), otherwise the largest tile in
    {2048,1024,512,256,128} that fits.  Budget is conservative for v7x (64 MiB
    physical VMEM, ~32 MiB scoped default); v5e/v6e (128 MiB) have extra headroom."""
    o128 = _round_up(output_dim, 128)

    def tile_bytes(t):
        return (2 * k * t * 2 + 2 * b_pad * t * 4 + 2 * t * 4 + b_pad * k * 2)

    if tile_bytes(o128) <= budget_bytes:
        return o128, o128
    for t in (2048, 1024, 512, 256, 128):
        if t <= o128 and tile_bytes(t) <= budget_bytes:
            return _round_up(o128, t), t
    return o128, 128


def init_params(key, output_dim, emb_dim, hid_dim):
    """Deterministic synthetic parameters.  PyTorch layouts kept for the reference;
    kernel weights are transposed, gate-stacked/lane-padded (GRU) and row-permuted,
    vocab-padded, bf16-cast (fc)."""
    ks = jax.random.split(key, 7)
    s = 0.1
    embedding = s * jax.random.normal(ks[0], (output_dim, emb_dim), jnp.float32)

    # PyTorch GRU: weight_ih (3H, E+H), weight_hh (3H, H), biases (3H,), order [r|z|n]
    w_ih = s * jax.random.normal(ks[1], (3 * hid_dim, emb_dim + hid_dim), jnp.float32)
    w_hh = s * jax.random.normal(ks[2], (3 * hid_dim, hid_dim), jnp.float32)
    b_ih = s * jax.random.normal(ks[3], (3 * hid_dim,), jnp.float32)
    b_hh = s * jax.random.normal(ks[4], (3 * hid_dim,), jnp.float32)
    # PyTorch Linear: weight (O, E+2H), bias (O,)
    w_fc = s * jax.random.normal(ks[5], (output_dim, emb_dim + 2 * hid_dim), jnp.float32)
    b_fc = s * jax.random.normal(ks[6], (output_dim,), jnp.float32)

    E, H = emb_dim, hid_dim
    Hp = _round_up(H, 128)
    K = E + 2 * H
    o_pad, tile_o = _choose_fc_tiling(output_dim, K)

    # GRU: stack [r|z|n] gate weights into one matrix per side (2 matmuls total);
    # hidden-side rows padded to Hp to match the zero-padded hidden columns.
    w_i = _stack_gates(w_ih.T, H, Hp)                                   # (E+H, 3Hp)
    w_h = _stack_gates(jnp.pad(w_hh.T, ((0, Hp - H), (0, 0))), H, Hp)   # (Hp, 3Hp)
    b_i = _stack_gates(b_ih[None, :], H, Hp)                            # (1, 3Hp)
    b_h = _stack_gates(b_hh[None, :], H, Hp)                            # (1, 3Hp)

    # fc: rows permuted from torch's [emb | h_new | ctx] to the kernel's
    # [emb | ctx | h_new] x_cat layout, vocab-padded, bf16.
    w_fc_t = w_fc.T                                                     # (E+2H, O)
    w_fc_perm = jnp.concatenate(
        [w_fc_t[:E], w_fc_t[E + H:E + 2 * H], w_fc_t[E:E + H]], axis=0)
    w_fc_pad = jnp.pad(w_fc_perm,
                       ((0, 0), (0, o_pad - output_dim))).astype(jnp.bfloat16)
    b_fc_pad = jnp.pad(b_fc, (0, o_pad - output_dim))[None, :]          # (1, O_pad) f32

    return dict(
        output_dim=output_dim, emb_dim=emb_dim, hid_dim=hid_dim,
        hid_pad=Hp, o_pad=o_pad, tile_o=tile_o,
        embedding=embedding,
        w_i=w_i, w_h=w_h, b_i=b_i, b_h=b_h,
        w_fc=w_fc_pad, b_fc=b_fc_pad,
        # original PyTorch-layout tensors for the pure-JAX reference
        _ref=dict(embedding=embedding, w_ih=w_ih, w_hh=w_hh,
                  b_ih=b_ih, b_hh=b_hh, w_fc=w_fc, b_fc=b_fc),
    )


# ---------------------------------------------------------------------------
# Pure-JAX reference (PyTorch semantics, f32)
# ---------------------------------------------------------------------------
def decoder_forward_ref(token_ids, hidden, context, p):
    r_ = p["_ref"]
    H = p["hid_dim"]
    emb = jnp.take(r_["embedding"], token_ids, axis=0)
    ctx = context[0]
    h = hidden[0]
    x = jnp.concatenate([emb, ctx], axis=1)
    gi = x @ r_["w_ih"].T + r_["b_ih"]
    gh = h @ r_["w_hh"].T + r_["b_hh"]
    r = jax.nn.sigmoid(gi[:, :H] + gh[:, :H])
    z = jax.nn.sigmoid(gi[:, H:2 * H] + gh[:, H:2 * H])
    n = jnp.tanh(gi[:, 2 * H:] + r * gh[:, 2 * H:])
    h_new = (1.0 - z) * n + z * h
    out = jnp.concatenate([emb, h_new, ctx], axis=1)
    pred = out @ r_["w_fc"].T + r_["b_fc"]
    return pred, h_new[None]


if __name__ == "__main__":
    key = jax.random.PRNGKey(0)
    B, E, H, O = 4, 32, 32, 1000   # vocab padded to 1024 -> single-block projection

    kp, ki, kh, kc = jax.random.split(key, 4)
    params = init_params(kp, output_dim=O, emb_dim=E, hid_dim=H)

    token_ids = jax.random.randint(ki, (B,), 0, O, dtype=jnp.int32)
    hidden = jax.random.normal(kh, (1, B, H), jnp.float32)
    context = jax.random.normal(kc, (1, B, H), jnp.float32)

    pred, h_out = decoder_forward(token_ids, hidden, context, params)
    pred = jax.block_until_ready(pred)
    h_out = jax.block_until_ready(h_out)

    pred_ref, h_ref = decoder_forward_ref(token_ids, hidden, context, params)
    assert pred.shape == (B, O) and h_out.shape == (1, B, H)
    # GRU path is f32 throughout.
    assert jnp.allclose(h_out, h_ref, atol=1e-4, rtol=1e-4), \
        float(jnp.max(jnp.abs(h_out - h_ref)))
    # fc projection uses bf16 weights/activations (f32 accumulate) -> loosened tolerance.
    assert jnp.allclose(pred, pred_ref, atol=2e-2, rtol=2e-2), \
        float(jnp.max(jnp.abs(pred - pred_ref)))

    print("KERNEL_OK")
</pallas_src>

<mosaic_0001>
module attributes {stable_mosaic.version = 11 : i64} {
  func.func @decoder_step_kernel(%arg0: i32, %arg1: memref<16x64xf32, #tpu.memory_space<vmem>>, %arg2: memref<16x128xf32, #tpu.memory_space<vmem>>, %arg3: memref<64x384xf32, #tpu.memory_space<vmem>>, %arg4: memref<128x384xf32, #tpu.memory_space<vmem>>, %arg5: memref<1x384xf32, #tpu.memory_space<vmem>>, %arg6: memref<1x384xf32, #tpu.memory_space<vmem>>, %arg7: memref<96x1024xbf16, #tpu.memory_space<vmem>>, %arg8: memref<1x1024xf32, #tpu.memory_space<vmem>>, %arg9: memref<16x1024xf32, #tpu.memory_space<vmem>>, %arg10: memref<16x128xf32, #tpu.memory_space<vmem>>, %arg11: memref<16x96xbf16, #tpu.memory_space<vmem>>) attributes {dimension_semantics = [#tpu.dimension_semantics<arbitrary>], iteration_bounds = array<i64: 1>, scalar_prefetch = 0 : i64, scratch_operands = 1 : i64, tpu.core_type = #tpu.core_type<tc>, window_params = [{pipeline_mode = #tpu.pipeline_mode<synchronous>, transform_indices = @transform_0, window_bounds = array<i64: 16, 64>}, {pipeline_mode = #tpu.pipeline_mode<synchronous>, transform_indices = @transform_1, window_bounds = array<i64: 16, 128>}, {pipeline_mode = #tpu.pipeline_mode<synchronous>, transform_indices = @transform_2, window_bounds = array<i64: 64, 384>}, {pipeline_mode = #tpu.pipeline_mode<synchronous>, transform_indices = @transform_3, window_bounds = array<i64: 128, 384>}, {pipeline_mode = #tpu.pipeline_mode<synchronous>, transform_indices = @transform_4, window_bounds = array<i64: 1, 384>}, {pipeline_mode = #tpu.pipeline_mode<synchronous>, transform_indices = @transform_5, window_bounds = array<i64: 1, 384>}, {transform_indices = @transform_6, window_bounds = array<i64: 96, 1024>}, {transform_indices = @transform_7, window_bounds = array<i64: 1, 1024>}, {transform_indices = @transform_8, window_bounds = array<i64: 16, 1024>}, {pipeline_mode = #tpu.pipeline_mode<synchronous>, transform_indices = @transform_9, window_bounds = array<i64: 16, 128>}]} {
    %c0_i32 = arith.constant 0 : i32
    %0 = arith.cmpi eq, %arg0, %c0_i32 : i32
    %1 = arith.extui %0 : i1 to i32
    %c0_i32_0 = arith.constant 0 : i32
    %2 = arith.cmpi ne, %1, %c0_i32_0 : i32
    scf.if %2 {
      %c0_8 = arith.constant 0 : index
      %c0_9 = arith.constant 0 : index
      %10 = vector.load %arg1[%c0_8, %c0_9] : memref<16x64xf32, #tpu.memory_space<vmem>>, vector<16x64xf32>
      %c0_10 = arith.constant 0 : index
      %c0_11 = arith.constant 0 : index
      %11 = vector.load %arg2[%c0_10, %c0_11] : memref<16x128xf32, #tpu.memory_space<vmem>>, vector<16x128xf32>
      %c0_12 = arith.constant 0 : index
      %c0_13 = arith.constant 0 : index
      %12 = vector.load %arg3[%c0_12, %c0_13] : memref<64x384xf32, #tpu.memory_space<vmem>>, vector<64x384xf32>
      %cst_14 = arith.constant dense<0.000000e+00> : vector<16x384xf32>
      %13 = tpu.matmul %10, %12, %cst_14 {dimension_numbers = #tpu.dot_dimension_numbers<[1], [0], [0], [1], [0, 0, 1, 1], [], []>} : vector<16x64xf32>, vector<64x384xf32>, vector<16x384xf32> -> vector<16x384xf32>
      %c0_15 = arith.constant 0 : index
      %c0_16 = arith.constant 0 : index
      %14 = vector.load %arg5[%c0_15, %c0_16] : memref<1x384xf32, #tpu.memory_space<vmem>>, vector<1x384xf32>
      %15 = vector.broadcast %14 : vector<1x384xf32> to vector<16x384xf32>
      %16 = arith.addf %13, %15 : vector<16x384xf32>
      %c0_17 = arith.constant 0 : index
      %c0_18 = arith.constant 0 : index
      %17 = vector.load %arg4[%c0_17, %c0_18] : memref<128x384xf32, #tpu.memory_space<vmem>>, vector<128x384xf32>
      %cst_19 = arith.constant dense<0.000000e+00> : vector<16x384xf32>
      %18 = tpu.matmul %11, %17, %cst_19 {dimension_numbers = #tpu.dot_dimension_numbers<[1], [0], [0], [1], [0, 0, 1, 1], [], []>} : vector<16x128xf32>, vector<128x384xf32>, vector<16x384xf32> -> vector<16x384xf32>
      %c0_20 = arith.constant 0 : index
      %c0_21 = arith.constant 0 : index
      %19 = vector.load %arg6[%c0_20, %c0_21] : memref<1x384xf32, #tpu.memory_space<vmem>>, vector<1x384xf32>
      %20 = vector.broadcast %19 : vector<1x384xf32> to vector<16x384xf32>
      %21 = arith.addf %18, %20 : vector<16x384xf32>
      %22 = vector.extract_strided_slice %16 {offsets = [0, 0], sizes = [16, 128], strides = [1, 1]} : vector<16x384xf32> to vector<16x128xf32>
      %23 = vector.extract_strided_slice %21 {offsets = [0, 0], sizes = [16, 128], strides = [1, 1]} : vector<16x384xf32> to vector<16x128xf32>
      %24 = arith.addf %22, %23 : vector<16x128xf32>
      %25 = arith.negf %24 : vector<16x128xf32>
      %26 = math.exp %25 : vector<16x128xf32>
      %cst_22 = arith.constant 1.000000e+00 : f32
      %27 = vector.broadcast %cst_22 : f32 to vector<16x128xf32>
      %28 = arith.addf %27, %26 : vector<16x128xf32>
      %29 = arith.divf %27, %28 : vector<16x128xf32>
      %30 = vector.extract_strided_slice %16 {offsets = [0, 128], sizes = [16, 128], strides = [1, 1]} : vector<16x384xf32> to vector<16x128xf32>
      %31 = vector.extract_strided_slice %21 {offsets = [0, 128], sizes = [16, 128], strides = [1, 1]} : vector<16x384xf32> to vector<16x128xf32>
      %32 = arith.addf %30, %31 : vector<16x128xf32>
      %33 = arith.negf %32 : vector<16x128xf32>
      %34 = math.exp %33 : vector<16x128xf32>
      %cst_23 = arith.constant 1.000000e+00 : f32
      %35 = vector.broadcast %cst_23 : f32 to vector<16x128xf32>
      %36 = arith.addf %35, %34 : vector<16x128xf32>
      %37 = arith.divf %35, %36 : vector<16x128xf32>
      %38 = vector.extract_strided_slice %16 {offsets = [0, 256], sizes = [16, 128], strides = [1, 1]} : vector<16x384xf32> to vector<16x128xf32>
      %39 = vector.extract_strided_slice %21 {offsets = [0, 256], sizes = [16, 128], strides = [1, 1]} : vector<16x384xf32> to vector<16x128xf32>
      %40 = arith.mulf %29, %39 : vector<16x128xf32>
      %41 = arith.addf %38, %40 : vector<16x128xf32>
      %42 = math.tanh %41 : vector<16x128xf32>
      %cst_24 = arith.constant 1.000000e+00 : f32
      %43 = vector.broadcast %cst_24 : f32 to vector<16x128xf32>
      %44 = arith.subf %43, %37 : vector<16x128xf32>
      %45 = arith.mulf %44, %42 : vector<16x128xf32>
      %46 = arith.mulf %37, %11 : vector<16x128xf32>
      %47 = arith.addf %45, %46 : vector<16x128xf32>
      %c0_25 = arith.constant 0 : index
      %c0_26 = arith.constant 0 : index
      %48 = vector.load %arg10[%c0_25, %c0_26] : memref<16x128xf32, #tpu.memory_space<vmem>>, vector<16x128xf32>
      tpu.vector_store %arg10[%c0_25, %c0_26], %47 {strides = array<i32>} : memref<16x128xf32, #tpu.memory_space<vmem>>, vector<16x128xf32>,
      %49 = vector.extract_strided_slice %47 {offsets = [0, 0], sizes = [16, 32], strides = [1, 1]} : vector<16x128xf32> to vector<16x32xf32>
      %50 = tpu.concatenate %10, %49 in 1 : vector<16x64xf32>, vector<16x32xf32> -> vector<16x96xf32>
      %51 = arith.truncf %50 : vector<16x96xf32> to vector<16x96xbf16>
      %c0_27 = arith.constant 0 : index
      %c0_28 = arith.constant 0 : index
      %52 = vector.load %arg11[%c0_27, %c0_28] : memref<16x96xbf16, #tpu.memory_space<vmem>>, vector<16x96xbf16>
      tpu.vector_store %arg11[%c0_27, %c0_28], %51 {strides = array<i32>} : memref<16x96xbf16, #tpu.memory_space<vmem>>, vector<16x96xbf16>,
    } else {
    }
    %c0 = arith.constant 0 : index
    %c0_1 = arith.constant 0 : index
    %3 = vector.load %arg11[%c0, %c0_1] : memref<16x96xbf16, #tpu.memory_space<vmem>>, vector<16x96xbf16>
    %c0_2 = arith.constant 0 : index
    %c0_3 = arith.constant 0 : index
    %4 = vector.load %arg7[%c0_2, %c0_3] : memref<96x1024xbf16, #tpu.memory_space<vmem>>, vector<96x1024xbf16>
    %cst = arith.constant dense<0.000000e+00> : vector<16x1024xf32>
    %5 = tpu.matmul %3, %4, %cst {dimension_numbers = #tpu.dot_dimension_numbers<[1], [0], [0], [1], [0, 0, 1, 1], [], []>} : vector<16x96xbf16>, vector<96x1024xbf16>, vector<16x1024xf32> -> vector<16x1024xf32>
    %c0_4 = arith.constant 0 : index
    %c0_5 = arith.constant 0 : index
    %6 = vector.load %arg8[%c0_4, %c0_5] : memref<1x1024xf32, #tpu.memory_space<vmem>>, vector<1x1024xf32>
    %7 = vector.broadcast %6 : vector<1x1024xf32> to vector<16x1024xf32>
    %8 = arith.addf %5, %7 : vector<16x1024xf32>
    %c0_6 = arith.constant 0 : index
    %c0_7 = arith.constant 0 : index
    %9 = vector.load %arg9[%c0_6, %c0_7] : memref<16x1024xf32, #tpu.memory_space<vmem>>, vector<16x1024xf32>
    tpu.vector_store %arg9[%c0_6, %c0_7], %8 {strides = array<i32>} : memref<16x1024xf32, #tpu.memory_space<vmem>>, vector<16x1024xf32>,
    return
  }
  func.func @transform_0(%arg0: i32) -> (i32, i32) {
    %c0_i32 = arith.constant 0 : i32
    %c0_i32_0 = arith.constant 0 : i32
    %c0_i32_1 = arith.constant 0 : i32
    return %c0_i32, %c0_i32_0 : i32, i32
  }
  func.func @transform_1(%arg0: i32) -> (i32, i32) {
    %c0_i32 = arith.constant 0 : i32
    %c0_i32_0 = arith.constant 0 : i32
    %c0_i32_1 = arith.constant 0 : i32
    return %c0_i32, %c0_i32_0 : i32, i32
  }
  func.func @transform_2(%arg0: i32) -> (i32, i32) {
    %c0_i32 = arith.constant 0 : i32
    %c0_i32_0 = arith.constant 0 : i32
    %c0_i32_1 = arith.constant 0 : i32
    return %c0_i32, %c0_i32_0 : i32, i32
  }
  func.func @transform_3(%arg0: i32) -> (i32, i32) {
    %c0_i32 = arith.constant 0 : i32
    %c0_i32_0 = arith.constant 0 : i32
    %c0_i32_1 = arith.constant 0 : i32
    return %c0_i32, %c0_i32_0 : i32, i32
  }
  func.func @transform_4(%arg0: i32) -> (i32, i32) {
    %c0_i32 = arith.constant 0 : i32
    %c0_i32_0 = arith.constant 0 : i32
    %c0_i32_1 = arith.constant 0 : i32
    return %c0_i32, %c0_i32_0 : i32, i32
  }
  func.func @transform_5(%arg0: i32) -> (i32, i32) {
    %c0_i32 = arith.constant 0 : i32
    %c0_i32_0 = arith.constant 0 : i32
    %c0_i32_1 = arith.constant 0 : i32
    return %c0_i32, %c0_i32_0 : i32, i32
  }
  func.func @transform_6(%arg0: i32) -> (i32, i32) {
    %c0_i32 = arith.constant 0 : i32
    %c0_i32_0 = arith.constant 0 : i32
    return %c0_i32, %arg0 : i32, i32
  }
  func.func @transform_7(%arg0: i32) -> (i32, i32) {
    %c0_i32 = arith.constant 0 : i32
    %c0_i32_0 = arith.constant 0 : i32
    return %c0_i32, %arg0 : i32, i32
  }
  func.func @transform_8(%arg0: i32) -> (i32, i32) {
    %c0_i32 = arith.constant 0 : i32
    %c0_i32_0 = arith.constant 0 : i32
    return %c0_i32, %arg0 : i32, i32
  }
  func.func @transform_9(%arg0: i32) -> (i32, i32) {
    %c0_i32 = arith.constant 0 : i32
    %c0_i32_0 = arith.constant 0 : i32
    %c0_i32_1 = arith.constant 0 : i32
    return %c0_i32, %c0_i32_0 : i32, i32
  }
}

</mosaic_0001>

<bundles_post_ra>
// kernel: tpu_custom_call.1
= control target key start
LH: loop header
LB: loop body
LE: loop exit
PB: predicated region body
PF: predicated region fallthrough
CT: control target
= control target key end

     0   :  { %15 = vsyncpa [#allocation4], 0  ;;  %s1706_s0 = inlined_call_operand.hbm [shape: f32[16,64], index: 0, kind: input, shape index: {}]   ;;  %s1707_s1 = inlined_call_operand.hbm [shape: f32[16,128], index: 1, kind: input, shape index: {}]   ;;  %s1708_s2 = inlined_call_operand.hbm [shape: f32[64,384], index: 2, kind: input, shape index: {}]   ;;  %s1709_s3 = inlined_call_operand.hbm [shape: f32[128,384], index: 3, kind: input, shape index: {}]   ;;  %s1710_s4 = inlined_call_operand.vmem [shape: f32[1,384], index: 4, kind: input, shape index: {}]   ;;  %s1711_s5 = inlined_call_operand.hbm [shape: f32[1,384], index: 5, kind: input, shape index: {}]   ;;  %s1712_s6 = inlined_call_operand.hbm [shape: bf16[96,1024], index: 6, kind: input, shape index: {}]   ;;  %s1713_s7 = inlined_call_operand.vmem [shape: f32[1,1024], index: 7, kind: input, shape index: {}]   ;;  %s1714_s8 = inlined_call_operand.hbm [shape: f32[16,1024], index: 8, kind: output, shape index: {0}]   ;;  %s1715_s9 = inlined_call_operand.hbm [shape: f32[16,128], index: 9, kind: output, shape index: {1}]  }
   0x1   :  { %16 = vsyncpa [#allocation7], 0 }
   0x2   :  { %17 = vsyncpa [#allocation10], 0 }
   0x3   :  { %18 = vsyncpa [#allocation13], 0 }
   0x4   :  { %19 = vsyncpa [#allocation5], 0 }
   0x5   :  { %20 = vsyncpa [#allocation16], 0  ;;  %s1532_s30 = smov [#allocation6]  }
   0x6   :  { %s38_s10 = sshll.u32 %s1532_s30, 4  ;;  %s39_s10 = int_to_ptr.vmem [resolvable:$true] %s38_s10 }
   0x7   :  { %s1368_s11 = scalar_lea.vmem %s39_s10, 256  ;;  %p1373_p1 = scmp.lt.s32.totalorder %s39_s10, %s39_s10 }
   0x8   :  { %p1369_p0 = scmp.ne.s32.totalorder %s39_s10, %s1368_s11  ;;  %p1374_p2 = scmp.lt.s32.totalorder %s1368_s11, %s1368_s11 }
   0xa   :  { %p1375_p3 = por %p1374_p2, %p1373_p1 }
   0xc   :  { %p1376_p4 = pnand %p1375_p3, %p1369_p0 }
   0xe   :  { %1379 = shalt.err (!%p1376_p4)
}
   0xf   :  { %s1533_s12 = smov 128   ;;  %s1534_s13 = smov 8  }
  0x10   :  { %44 = dma.hbm_to_vmem [thread:$0]  %s1707_s1, 256, %s39_s10, [#allocation7], %s1533_s12, %s1533_s12, %s1534_s13  }
  0x11   :  { %s1535_s16 = smov [#allocation9]   ;;  %s1536_s18 = smov [#allocation3]  }
  0x12   :  { %s62_s17 = sshll.u32 %s1535_s16, 4  ;;  %s26_s19 = sshll.u32 %s1536_s18, 4  ;;  %s63_s17 = int_to_ptr.vmem [resolvable:$true] %s62_s17  ;;  %s27_s19 = int_to_ptr.vmem [resolvable:$true] %s26_s19 }
  0x13   :  { %s1388_s20 = scalar_lea.vmem %s63_s17, 6144  ;;  %p1393_p6 = scmp.lt.s32.totalorder %s63_s17, %s63_s17 }
  0x14   :  { %p1389_p5 = scmp.ne.s32.totalorder %s63_s17, %s1388_s20  ;;  %p1394_p7 = scmp.lt.s32.totalorder %s1388_s20, %s1388_s20 }
  0x16   :  { %p1395_p8 = por %p1394_p7, %p1393_p6 }
  0x18   :  { %p1396_p9 = pnand %p1395_p8, %p1389_p5 }
  0x1a   :  { %1399 = shalt.err (!%p1396_p9)
}
  0x1b   :  { %s1537_s21 = smov 384   ;;  %s1538_s22 = smov 24  }
  0x1c   :  { %68 = dma.hbm_to_vmem [thread:$0]  %s1709_s3, 6144, %s63_s17, [#allocation10], %s1537_s21, %s1537_s21, %s1538_s22  }
  0x1d   :  { %s1408_s1 = scalar_lea.vmem %s27_s19, 256  ;;  %p1413_p11 = scmp.lt.s32.totalorder %s27_s19, %s27_s19 }
  0x1e   :  { %p1409_p10 = scmp.ne.s32.totalorder %s27_s19, %s1408_s1  ;;  %p1414_p12 = scmp.lt.s32.totalorder %s1408_s1, %s1408_s1 }
  0x20   :  { %p1415_p13 = por %p1414_p12, %p1413_p11 }
  0x22   :  { %p1416_p0 = pnand %p1415_p13, %p1409_p10 }
  0x24   :  { %1419 = shalt.err (!%p1416_p0)
}
  0x25   :  { %32 = dma.hbm_to_vmem [thread:$0]  %s1706_s0, 256, %s27_s19, [#allocation4], %s1533_s12, %s1533_s12, %s1534_s13  }
  0x26   :  { %s1539_s27 = smov [#allocation8]   ;;  %s1540_s29 = smov [#allocation11]  }
  0x27   :  { %s50_s28 = sshll.u32 %s1539_s27, 4  ;;  %s77_s3 = sshll.u32 %s1540_s29, 4  ;;  %s51_s28 = int_to_ptr.vmem [resolvable:$true] %s50_s28  ;;  %s78_s3 = int_to_ptr.vmem [resolvable:$true] %s77_s3 }
  0x28   :  { %s1428_s30 = scalar_lea.vmem %s51_s28, 3072  ;;  %p1433_p2 = scmp.lt.s32.totalorder %s51_s28, %s51_s28 }
  0x29   :  { %p1429_p1 = scmp.ne.s32.totalorder %s51_s28, %s1428_s30  ;;  %p1434_p3 = scmp.lt.s32.totalorder %s1428_s30, %s1428_s30 }
  0x2b   :  { %p1435_p4 = por %p1434_p3, %p1433_p2 }
  0x2d   :  { %p1436_p5 = pnand %p1435_p4, %p1429_p1 }
  0x2f   :  { %1439 = shalt.err (!%p1436_p5)
}
  0x30   :  { %56 = dma.hbm_to_vmem [thread:$0]  %s1708_s2, 3072, %s51_s28, [#allocation7], %s1537_s21, %s1537_s21, %s1538_s22  }
  0x31   :  { %s1448_s14 = scalar_lea.vmem %s78_s3, 48  ;;  %s1452_s0 = scalar_lea.vmem %s78_s3, 64 }
  0x32   :  { %p1449_p6 = scmp.ne.s32.totalorder %s78_s3, %s1448_s14  ;;  %p1453_p7 = scmp.lt.s32.totalorder %s78_s3, %s78_s3 }
  0x33   :  { %p1454_p8 = scmp.lt.s32.totalorder %s1452_s0, %s1448_s14 }
  0x35   :  { %p1455_p9 = por %p1454_p8, %p1453_p7 }
  0x37   :  { %p1456_p10 = pnand %p1455_p9, %p1449_p6 }
  0x39   :  { %1459 = shalt.err (!%p1456_p10)
}
  0x3a   :  { %80 = dma.hbm_to_vmem [thread:$0]  %s1711_s5, 48, %s78_s3, [#allocation10]  }
  0x3b   :  { %s1541_s17 = smov [#allocation12]  }
  0x3c   :  { %s86_s18 = sshll.u32 %s1541_s17, 4  ;;  %s87_s18 = int_to_ptr.vmem [resolvable:$true] %s86_s18 }
  0x3d   :  { %s1468_s19 = scalar_lea.vmem %s87_s18, 6144  ;;  %p1473_p12 = scmp.lt.s32.totalorder %s87_s18, %s87_s18 }
  0x3e   :  { %p1469_p11 = scmp.ne.s32.totalorder %s87_s18, %s1468_s19  ;;  %p1474_p13 = scmp.lt.s32.totalorder %s1468_s19, %s1468_s19 }
  0x40   :  { %p1475_p0 = por %p1474_p13, %p1473_p12 }
  0x42   :  { %p1476_p1 = pnand %p1475_p0, %p1469_p11 }
  0x44   :  { %1479 = shalt.err (!%p1476_p1)
}
  0x45   :  { %s1542_s2 = smov 512   ;;  %s1543_s20 = smov 32  }
  0x46   :  { %92 = dma.hbm_to_vmem [thread:$0]  %s1712_s6, 6144, %s87_s18, [#allocation13], %s1542_s2, %s1542_s2, %s1543_s20  }
  0x47   :  { %1520 = dma.done.wait [#allocation4], 256  }
  0x48   :  { %1521 = vsyncadd [#allocation4], 4294967040 }
  0x49   :  { %1522 = dma.done.wait [#allocation7], 3328  }
  0x4a   :  { %1523 = vsyncadd [#allocation7], 4294963968 }
  0x4b   :  { %1524 = dma.done.wait [#allocation10], 6192  }
  0x4c   :  { %1525 = vsyncadd [#allocation10], 4294961104 }
  0x4d   :  { %1526 = dma.done.wait [#allocation13], 6144  }
  0x4e   :  { %1527 = vsyncadd [#allocation13], 4294961152  ;;  %v1544_v0 = vmov 0.0   ;;  %v144_v1 = vld [vmem:[#allocation8 + $0xb0] sm:$0xff]  ;;  %v143_v2 = vld [vmem:[#allocation8 + $0xa8] sm:$0xff]  ;;  %vm163_vm0 = vcmask 523264  }
  0x4f   :  { %234 = vmatprep.mubr.f32.mxu0 %v1544_v0  ;;  %v141_v3 = vld [vmem:[#allocation8 + $0x98] sm:$0xff]  ;;  %186 = vmatprep.subr.mxu0 %v144_v1  ;;  %v140_v4 = vld [vmem:[#allocation8 + $0x90] sm:$0xff]  ;;  %v138_v5 = vld [vmem:[#allocation8 + $0x80] sm:$0xff]  ;;  %vm601_vm1 = vcmask 781312   ;;  %vm941_vm2 = vcmask 785408   ;;  %s1547_s23 = smov [#allocation15]  }
  0x50   :  { %187 = vmatpush1.msra.mxu0 %v143_v2  ;;  %v137_v6 = vld [vmem:[#allocation8 + $0x78] sm:$0xff]  ;;  %v135_v7 = vld [vmem:[#allocation8 + $0x68] sm:$0xff]  ;;  %v134_v8 = vld [vmem:[#allocation8 + $0x60] sm:$0xff]  ;;  %s1150_s24 = sshll.u32 %s1547_s23, 4  ;;  %s1151_s24 = int_to_ptr.vmem [resolvable:$true] %s1150_s24 }
  0x51   :  { %188 = vmatprep.subr.mxu0 %v141_v3  ;;  %v1625_v9 = vld [vmem:[#allocation3] sm:$0xff]  ;;  %v132_v10 = vld [vmem:[#allocation8 + $0x50] sm:$0xff]  ;;  %v131_v11 = vld [vmem:[#allocation8 + $0x48] sm:$0xff]  ;;  %s1480_s1 = scalar_lea.vmem %s1151_s24, 256  ;;  %p1485_p3 = scmp.lt.s32.totalorder %s1151_s24, %s1151_s24 }
  0x52   :  { %189 = vmatpush1.msra.mxu0 %v140_v4  ;;  %1278 = vmatprep.mubr.msk.f32.mxu1 %vm163_vm0, %v1625_v9  ;;  %v129_v12 = vld [vmem:[#allocation8 + $0x38] sm:$0xff]  ;;  %v128_v13 = vld [vmem:[#allocation8 + $0x30] sm:$0xff]  ;;  %v126_v14 = vld [vmem:[#allocation8 + $0x20] sm:$0xff]  ;;  %p1481_p2 = scmp.ne.s32.totalorder %s1151_s24, %s1480_s1  ;;  %p1486_p4 = scmp.lt.s32.totalorder %s1480_s1, %s1480_s1 }
  0x53   :  { %190 = vmatprep.subr.mxu0 %v138_v5  ;;  %v125_v15 = vld [vmem:[#allocation8 + $0x18] sm:$0xff]  ;;  %v123_v17 = vld [vmem:[#allocation8 + $0x8] sm:$0xff]  ;;  %v142_v18 = vld [vmem:[#allocation8 + $0xa0] sm:$0xff] }
  0x54   :  { %191 = vmatpush1.msra.mxu0 %v137_v6  ;;  %v145_v16 = vld [vmem:[#allocation8 + $0xb8] sm:$0xff]  ;;  %v122_v19 = vld [vmem:[#allocation8] sm:$0xff]  ;;  %v139_v20 = vld [vmem:[#allocation8 + $0x88] sm:$0xff]  ;;  %p1487_p5 = por %p1486_p4, %p1485_p3 }
  0x55   :  { %192 = vmatprep.subr.mxu0 %v135_v7  ;;  %1262 = vmatprep.subr.mxu1 %v145_v16  ;;  %v368_v21 = vld [vmem:[#allocation9 + $0x170] sm:$0xff]  ;;  %v367_v22 = vld [vmem:[#allocation9 + $0x168] sm:$0xff]  ;;  %v365_v23 = vld [vmem:[#allocation9 + $0x158] sm:$0xff] }
  0x56   :  { %193 = vmatpush1.msra.mxu0 %v134_v8  ;;  %1263 = vmatpush3.msra.mxu1 %v145_v16  ;;  %v136_v24 = vld [vmem:[#allocation8 + $0x70] sm:$0xff]  ;;  %v362_v26 = vld [vmem:[#allocation9 + $0x140] sm:$0xff]  ;;  %v133_v27 = vld [vmem:[#allocation8 + $0x58] sm:$0xff]  ;;  %p1488_p6 = pnand %p1487_p5, %p1481_p2 }
  0x57   :  { %194 = vmatprep.subr.mxu0 %v132_v10  ;;  %1264 = vmatprep.subr.mxu1 %v142_v18  ;;  %v364_v25 = vld [vmem:[#allocation9 + $0x150] sm:$0xff]  ;;  %v361_v28 = vld [vmem:[#allocation9 + $0x138] sm:$0xff]  ;;  %v359_v29 = vld [vmem:[#allocation9 + $0x128] sm:$0xff] }
  0x58   :  { %195 = vmatpush1.msra.mxu0 %v131_v11  ;;  %1265 = vmatpush3.msra.mxu1 %v142_v18  ;;  %v358_v30 = vld [vmem:[#allocation9 + $0x120] sm:$0xff]  ;;  %v356_v32 = vld [vmem:[#allocation9 + $0x110] sm:$0xff]  ;;  %v1632_v33 = vld [vmem:[#allocation3 + $0x8] sm:$0xff] }
  0x59   :  { %196 = vmatprep.subr.mxu0 %v129_v12  ;;  %1266 = vmatprep.subr.mxu1 %v139_v20  ;;  %v130_v31 = vld [vmem:[#allocation8 + $0x40] sm:$0xff]  ;;  %v355_v34 = vld [vmem:[#allocation9 + $0x108] sm:$0xff]  ;;  %v353_v35 = vld [vmem:[#allocation9 + $0xf8] sm:$0xff] }
  0x5a   :  { %197 = vmatpush1.msra.mxu0 %v128_v13  ;;  %1267 = vmatpush3.msra.mxu1 %v139_v20  ;;  %v127_v36 = vld [vmem:[#allocation8 + $0x28] sm:$0xff]  ;;  %v352_v37 = vld [vmem:[#allocation9 + $0xf0] sm:$0xff]  ;;  %v350_v38 = vld [vmem:[#allocation9 + $0xe0] sm:$0xff] }
  0x5b   :  { %198 = vmatprep.subr.mxu0 %v126_v14  ;;  %1268 = vmatprep.subr.mxu1 %v136_v24  ;;  %v124_v39 = vld [vmem:[#allocation8 + $0x10] sm:$0xff]  ;;  %v349_v40 = vld [vmem:[#allocation9 + $0xd8] sm:$0xff]  ;;  %v347_v41 = vld [vmem:[#allocation9 + $0xc8] sm:$0xff] }
  0x5c   :  { %199 = vmatpush1.msra.mxu0 %v125_v15  ;;  %1269 = vmatpush3.msra.mxu1 %v136_v24  ;;  %v346_v42 = vld [vmem:[#allocation9 + $0xc0] sm:$0xff]  ;;  %v369_v43 = vld [vmem:[#allocation9 + $0x178] sm:$0xff]  ;;  %v344_v44 = vld [vmem:[#allocation9 + $0xb0] sm:$0xff] }
  0x5d   :  { %200 = vmatprep.subr.mxu0 %v123_v17  ;;  %1270 = vmatprep.subr.mxu1 %v133_v27  ;;  %v343_v45 = vld [vmem:[#allocation9 + $0xa8] sm:$0xff]  ;;  %v341_v46 = vld [vmem:[#allocation9 + $0x98] sm:$0xff]  ;;  %v366_v47 = vld [vmem:[#allocation9 + $0x160] sm:$0xff] }
  0x5e   :  { %201 = vmatpush1.msra.mxu0 %v122_v19  ;;  %1271 = vmatpush3.msra.mxu1 %v133_v27  ;;  %v340_v48 = vld [vmem:[#allocation9 + $0x90] sm:$0xff]  ;;  %v338_v49 = vld [vmem:[#allocation9 + $0x80] sm:$0xff]  ;;  %v363_v50 = vld [vmem:[#allocation9 + $0x148] sm:$0xff] }
  0x5f   :  { %1169 = vmatmul.mubr.msk.f32.vlgmr.msra.gmra.mxu0 %vm163_vm0, %v1625_v9  ;;  %387 = vmatprep.subr.mxu0 %v368_v21  ;;  %v337_v51 = vld [vmem:[#allocation9 + $0x78] sm:$0xff]  ;;  %v335_v52 = vld [vmem:[#allocation9 + $0x68] sm:$0xff]  ;;  %v360_v53 = vld [vmem:[#allocation9 + $0x130] sm:$0xff] }
  0x60   :  { %388 = vmatpush1.msra.mxu0 %v367_v22  ;;  %240 = vmatprep.mubr.f32.mxu0 %v1544_v0  ;;  %v334_v54 = vld [vmem:[#allocation9 + $0x60] sm:$0xff]  ;;  %v332_v55 = vld [vmem:[#allocation9 + $0x50] sm:$0xff]  ;;  %v357_v56 = vld [vmem:[#allocation9 + $0x118] sm:$0xff] }
  0x61   :  { %389 = vmatprep.subr.mxu0 %v365_v23  ;;  %1272 = vmatprep.subr.mxu1 %v130_v31  ;;  %v331_v57 = vld [vmem:[#allocation9 + $0x48] sm:$0xff]  ;;  %v329_v58 = vld [vmem:[#allocation9 + $0x38] sm:$0xff]  ;;  %v354_v59 = vld [vmem:[#allocation9 + $0x100] sm:$0xff] }
  0x62   :  { %390 = vmatpush1.msra.mxu0 %v364_v25  ;;  %1273 = vmatpush3.msra.mxu1 %v130_v31  ;;  %v328_v60 = vld [vmem:[#allocation9 + $0x30] sm:$0xff]  ;;  %v326_v61 = vld [vmem:[#allocation9 + $0x20] sm:$0xff]  ;;  %v351_v62 = vld [vmem:[#allocation9 + $0xe8] sm:$0xff] }
  0x63   :  { %391 = vmatprep.subr.mxu0 %v362_v26  ;;  %1170 = vmatmul.mubr.msk.f32.gmra.mxu0 %vm163_vm0, %v1632_v33  ;;  %v325_v63 = vld [vmem:[#allocation9 + $0x18] sm:$0xff]  ;;  %v323_v1 = vld [vmem:[#allocation9 + $0x8] sm:$0xff]  ;;  %v348_v2 = vld [vmem:[#allocation9 + $0xd0] sm:$0xff] }
  0x64   :  { %392 = vmatpush1.msra.mxu0 %v361_v28  ;;  %1274 = vmatprep.subr.mxu1 %v127_v36  ;;  %v322_v3 = vld [vmem:[#allocation9] sm:$0xff]  ;;  %v1639_v4 = vld [vmem:[#allocation6] sm:$0xff]  ;;  %v345_v5 = vld [vmem:[#allocation9 + $0xb8] sm:$0xff] }
  0x65   :  { %393 = vmatprep.subr.mxu0 %v359_v29  ;;  %1275 = vmatpush3.msra.mxu1 %v127_v36  ;;  %v342_v6 = vld [vmem:[#allocation9 + $0xa0] sm:$0xff]  ;;  %v1643_v7 = vld [vmem:[#allocation6 + $0x8] sm:$0xff]  ;;  %v339_v8 = vld [vmem:[#allocation9 + $0x88] sm:$0xff] }
  0x66   :  { %394 = vmatpush1.msra.mxu0 %v358_v30  ;;  %1276 = vmatprep.subr.mxu1 %v124_v39  ;;  %v336_v10 = vld [vmem:[#allocation9 + $0x70] sm:$0xff]  ;;  %v333_v11 = vld [vmem:[#allocation9 + $0x58] sm:$0xff]  ;;  %v330_v12 = vld [vmem:[#allocation9 + $0x40] sm:$0xff] }
  0x67   :  { %395 = vmatprep.subr.mxu0 %v356_v32  ;;  %1277 = vmatpush3.msra.mxu1 %v124_v39  ;;  %v324_v13 = vld [vmem:[#allocation9 + $0x10] sm:$0xff]  ;;  %v646_v14 = vld [vmem:[#allocation12 + $0x140] sm:$0xff]  ;;  %v148_v39 = vlaneseq }
  0x68   :  { %396 = vmatpush1.msra.mxu0 %v355_v34  ;;  %451 = vmatprep.mubr.f32.mxu0 %v1544_v0  ;;  %v650_v15 = vld [vmem:[#allocation12 + $0x160] sm:$0xff]  ;;  %v647_v16 = vld [vmem:[#allocation12 + $0x148] sm:$0xff] }
  0x69   :  { %397 = vmatprep.subr.mxu0 %v353_v35  ;;  %1281 = vmatprep.subr.mxu1 %v369_v43  ;;  %v1220_v17 = vcombine.low %v646_v14, %v650_v15  ;;  %v1221_v18 = vcombine.high %v646_v14, %v650_v15  ;;  %v651_v19 = vld [vmem:[#allocation12 + $0x168] sm:$0xff]  ;;  %v638_v20 = vld [vmem:[#allocation12 + $0x100] sm:$0xff] }
  0x6a   :  { %398 = vmatpush1.msra.mxu0 %v352_v37  ;;  %1279 = vmatmul.mubr.msk.f32.vlgmr.msra.gmra.mxu1 %vm163_vm0, %v1632_v33  ;;  %v642_v21 = vld [vmem:[#allocation12 + $0x120] sm:$0xff]  ;;  %v1222_v22 = vcombine.low %v647_v16, %v651_v19  ;;  %v1223_v23 = vcombine.high %v647_v16, %v651_v19  ;;  %v639_v25 = vld [vmem:[#allocation12 + $0x108] sm:$0xff] }
  0x6b   :  { %399 = vmatprep.subr.mxu0 %v350_v38  ;;  %1282 = vmatpush3.msra.mxu1 %v369_v43  ;;  %v1213_v24 = vcombine.high %v638_v20, %v642_v21  ;;  %v643_v26 = vld [vmem:[#allocation12 + $0x128] sm:$0xff]  ;;  %v630_v27 = vld [vmem:[#allocation12 + $0xc0] sm:$0xff]  ;;  %v1212_v32 = vcombine.low %v638_v20, %v642_v21 }
  0x6c   :  { %400 = vmatpush1.msra.mxu0 %v349_v40  ;;  %1283 = vmatprep.subr.mxu1 %v366_v47  ;;  %v1215_v28 = vcombine.high %v639_v25, %v643_v26  ;;  %v634_v29 = vld [vmem:[#allocation12 + $0xe0] sm:$0xff]  ;;  %v631_v30 = vld [vmem:[#allocation12 + $0xc8] sm:$0xff]  ;;  %v1214_v34 = vcombine.low %v639_v25, %v643_v26 }
  0x6d   :  { %401 = vmatprep.subr.mxu0 %v347_v41  ;;  %1284 = vmatpush3.msra.mxu1 %v366_v47  ;;  %v635_v31 = vld [vmem:[#allocation12 + $0xe8] sm:$0xff]  ;;  %v1205_v35 = vcombine.high %v630_v27, %v634_v29  ;;  %v1204_v37 = vcombine.low %v630_v27, %v634_v29  ;;  %v1648_v41 = vshrl.u32 %v148_v39, 7  ;;  %v622_v39 = vld [vmem:[#allocation12 + $0x80] sm:$0xff] }
  0x6e   :  { %402 = vmatpush1.msra.mxu0 %v346_v42  ;;  %1285 = vmatprep.subr.mxu1 %v363_v50  ;;  %v1207_v36 = vcombine.high %v631_v30, %v635_v31  ;;  %v1206_v38 = vcombine.low %v631_v30, %v635_v31 }
  0x6f   :  { %403 = vmatprep.subr.mxu0 %v344_v44  ;;  %1286 = vmatpush3.msra.mxu1 %v363_v50  ;;  %v1651_v43 = vsub.s32 0, %v1648_v41  ;;  %v146_v44 = vld [vmem:[%s1710_s4] sm:$0x7]  ;;  %v1659_v50 = vsub.s32 1, %v1648_v41  ;;  %v1664_v19 = vsub.s32 2, %v1648_v41  ;;  %s1546_s4 = smov 64  }
  0x70   :  { %404 = vmatpush1.msra.mxu0 %v343_v45  ;;  %1287 = vmatprep.subr.mxu1 %v360_v53 }
  0x71   :  { %405 = vmatprep.subr.mxu0 %v341_v46  ;;  %1288 = vmatpush3.msra.mxu1 %v360_v53  ;;  %v370_v46 = vld [vmem:[#allocation11] sm:$0x7]  ;;  %v151_v47 = vrot.slane %v146_v44, %v1651_v43  ;;  %v159_v25 = vrot.slane %v146_v44, %v1664_v19 }
  0x72   :  { %406 = vmatpush1.msra.mxu0 %v340_v48  ;;  %1289 = vmatprep.subr.mxu1 %v357_v56  ;;  %v375_v48 = vrot.slane %v370_v46, %v1651_v43  ;;  %v383_v20 = vrot.slane %v370_v46, %v1664_v19 }
  0x73   :  { %407 = vmatprep.subr.mxu0 %v338_v49  ;;  %1290 = vmatpush3.msra.mxu1 %v357_v56  ;;  %v155_v56 = vrot.slane %v146_v44, %v1659_v50 }
  0x74   :  { %408 = vmatpush1.msra.mxu0 %v337_v51  ;;  %1291 = vmatprep.subr.mxu1 %v354_v59 }
  0x75   :  { %409 = vmatprep.subr.mxu0 %v335_v52  ;;  %1292 = vmatpush3.msra.mxu1 %v354_v59 }
  0x76   :  { %410 = vmatpush1.msra.mxu0 %v334_v54  ;;  %1293 = vmatprep.subr.mxu1 %v351_v62  ;;  %v379_v54 = vrot.slane %v370_v46, %v1659_v50 }
  0x77   :  { %411 = vmatprep.subr.mxu0 %v332_v55  ;;  %1294 = vmatpush3.msra.mxu1 %v351_v62 }
  0x78   :  { %412 = vmatpush1.msra.mxu0 %v331_v57  ;;  %1295 = vmatprep.subr.mxu1 %v348_v2 }
  0x79   :  { %413 = vmatprep.subr.mxu0 %v329_v58  ;;  %1296 = vmatpush3.msra.mxu1 %v348_v2 }
  0x7a   :  { %414 = vmatpush1.msra.mxu0 %v328_v60  ;;  %1297 = vmatprep.subr.mxu1 %v345_v5 }
  0x7b   :  { %415 = vmatprep.subr.mxu0 %v326_v61  ;;  %1298 = vmatpush3.msra.mxu1 %v345_v5 }
  0x7c   :  { %416 = vmatpush1.msra.mxu0 %v325_v63  ;;  %1299 = vmatprep.subr.mxu1 %v342_v6 }
  0x7d   :  { %417 = vmatprep.subr.mxu0 %v323_v1  ;;  %1313 = vmatprep.mubr.f32.mxu1 %v1639_v4 }
  0x7e   :  { %418 = vmatpush1.msra.mxu0 %v322_v3  ;;  %1300 = vmatpush3.msra.mxu1 %v342_v6 }
  0x7f   :  { %452 = vmatmul.mubr.f32.vlgmr.msra.gmra.mxu0 %v1639_v4  ;;  %1301 = vmatprep.subr.mxu1 %v339_v8 }
  0x80   :  { %457 = vmatprep.mubr.f32.mxu0 %v1544_v0  ;;  %1302 = vmatpush3.msra.mxu1 %v339_v8  ;;  %v327_v0 = vld [vmem:[#allocation9 + $0x28] sm:$0xff] }
  0x81   :  { %1303 = vmatprep.subr.mxu1 %v336_v10  ;;  %949 = vmatprep.subr.bf16.mxu0 %v1221_v18 }
  0x82   :  { %1304 = vmatpush3.msra.mxu1 %v336_v10  ;;  %950 = vmatpush1.bf16.msra.mxu0 %v1220_v17 }
  0x83   :  { %458 = vmatmul.mubr.f32.gmra.mxu0 %v1643_v7  ;;  %1305 = vmatprep.subr.mxu1 %v333_v11 }
  0x84   :  { %1306 = vmatpush3.msra.mxu1 %v333_v11  ;;  %951 = vmatprep.subr.bf16.mxu0 %v1213_v24 }
  0x85   :  { %1307 = vmatprep.subr.mxu1 %v330_v12 }
  0x86   :  { %1308 = vmatpush3.msra.mxu1 %v330_v12  ;;  %952 = vmatpush1.bf16.msra.mxu0 %v1212_v32 }
  0x87   :  { %1309 = vmatprep.subr.mxu1 %v327_v0  ;;  %953 = vmatprep.subr.bf16.mxu0 %v1205_v35 }
  0x88   :  { %1310 = vmatpush3.msra.mxu1 %v327_v0 }
  0x89   :  { %1311 = vmatprep.subr.mxu1 %v324_v13 }
  0x8a   :  { %1312 = vmatpush3.msra.mxu1 %v324_v13  ;;  %954 = vmatpush1.bf16.msra.mxu0 %v1204_v37 }
  0x8b   :  { %1314 = vmatmul.mubr.f32.vlgmr.msra.gmra.mxu1 %v1643_v7  ;;  %992 = vmatprep.subr.bf16.mxu1 %v1223_v23 }
  0x8c   :  { %993 = vmatpush1.bf16.msra.mxu1 %v1222_v22 }
  0x8d   :  { %994 = vmatprep.subr.bf16.mxu1 %v1215_v28 }
  0x90   :  { %995 = vmatpush1.bf16.msra.mxu1 %v1214_v34 }
  0x91   :  { %996 = vmatprep.subr.bf16.mxu1 %v1207_v36 }
  0x94   :  { %997 = vmatpush1.bf16.msra.mxu1 %v1206_v38 }
 0x11f   :  { %v236_v40 = vpop.f32.mrf.mxu0 }
 0x120   :  { %v237_v52 = vadd.f32 %v236_v40, %v151_v47  ;;  %v626_v40 = vld [vmem:[#allocation12 + $0xa0] sm:$0xff] }
 0x121   :  { %v238_v42 = vpop.f32.mrf.mxu0  ;;  %v1197_v44 = vcombine.high %v622_v39, %v626_v40  ;;  %v1196_v46 = vcombine.low %v622_v39, %v626_v40 }
 0x122   :  { %v239_v1 = vadd.f32 %v238_v42, %v155_v56  ;;  %v623_v42 = vld [vmem:[#allocation12 + $0x88] sm:$0xff] }
 0x123   :  { %v242_v45 = vpop.f32.mrf.mxu0  ;;  %955 = vmatprep.subr.bf16.mxu0 %v1197_v44  ;;  %v633_v44 = vld [vmem:[#allocation12 + $0xd8] sm:$0xff] }
 0x124   :  { %v243_v59 = vadd.f32 %v242_v45, %v151_v47  ;;  %v627_v45 = vld [vmem:[#allocation12 + $0xa8] sm:$0xff]  ;;  %956 = vmatpush1.bf16.msra.mxu0 %v1196_v46 }
 0x125   :  { %v244_v49 = vpop.f32.mrf.mxu0  ;;  %v1198_v47 = vcombine.low %v623_v42, %v627_v45 }
 0x126   :  { %v245_v8 = vadd.f32 %v244_v49, %v155_v56 }
 0x12a   :  { %v1280_v13 = vpop.f32.mrf.mxu1 }
 0x12b   :  { %v319_v35 = vadd.f32 %v1280_v13, %v159_v25 }
 0x12c   :  { %v313_v16 = vpop.f32.mrf.mxu1 }
 0x12d   :  { %v314_v29 = vadd.f32 %v313_v16, %v159_v25  ;;  %v1545_v16 = vmov 0  }
 0x12e   :  { %977 = vmatprep.mubr.bf16.mxu0 %v1545_v16  ;;  %1020 = vmatprep.mubr.bf16.mxu1 %v1545_v16 }
 0x13f   :  { %v453_v51 = vpop.f32.mrf.mxu0 }
 0x140   :  { %v454_v53 = vadd.f32 %v453_v51, %v375_v48 }
 0x141   :  { %v455_v55 = vpop.f32.mrf.mxu0 }
 0x142   :  { %v539_v57 = vadd.f32 %v454_v53, %v237_v52  ;;  %v456_v61 = vadd.f32 %v455_v55, %v379_v54  ;;  %v614_v53 = vld [vmem:[#allocation12 + $0x40] sm:$0xff]  ;;  %v615_v55 = vld [vmem:[#allocation12 + $0x48] sm:$0xff] }
 0x143   :  { %v459_v58 = vpop.f32.mrf.mxu0 }
 0x144   :  { %v1173_v60 = vmul.f32 -1.442695, %v539_v57  ;;  %v460_v62 = vadd.f32 %v459_v58, %v375_v48  ;;  %v553_v5 = vadd.f32 %v456_v61, %v239_v1  ;;  %v1199_v48 = vcombine.high %v623_v42, %v627_v45  ;;  %v636_v42 = vld [vmem:[#allocation12 + $0xf0] sm:$0xff] }
 0x145   :  { %v461_v63 = vpop.f32.mrf.mxu0 }
 0x146   :  { %1340 = vpow2.f32 %v1173_v60  ;;  %v540_v2 = vadd.f32 %v460_v62, %v243_v59  ;;  %v462_v3 = vadd.f32 %v461_v63, %v379_v54  ;;  %v1175_v11 = vmul.f32 -1.442695, %v553_v5  ;;  %998 = vmatprep.subr.bf16.mxu1 %v1199_v48  ;;  %v618_v54 = vld [vmem:[#allocation12 + $0x60] sm:$0xff]  ;;  %v619_v59 = vld [vmem:[#allocation12 + $0x68] sm:$0xff]  ;;  %v624_v48 = vld [vmem:[#allocation12 + $0x90] sm:$0xff] }
 0x147   :  { %999 = vmatpush1.bf16.msra.mxu1 %v1198_v47  ;;  %v1189_v58 = vcombine.high %v614_v53, %v618_v54  ;;  %v1188_v60 = vcombine.low %v614_v53, %v618_v54  ;;  %v1190_v61 = vcombine.low %v615_v55, %v619_v59  ;;  %v1191_v62 = vcombine.high %v615_v55, %v619_v59  ;;  %v607_v5 = vld [vmem:[#allocation12 + $0x8] sm:$0xff]  ;;  %v617_v59 = vld [vmem:[#allocation12 + $0x58] sm:$0xff] }
 0x148   :  { %v1174_v6 = vmul.f32 -1.442695, %v540_v2  ;;  %v554_v10 = vadd.f32 %v462_v3, %v245_v8  ;;  %v606_v2 = vld [vmem:[#allocation12] sm:$0xff] }
 0x149   :  { %957 = vmatprep.subr.bf16.mxu0 %v1189_v58  ;;  %v610_v3 = vld [vmem:[#allocation12 + $0x20] sm:$0xff]  ;;  %1000 = vmatprep.subr.bf16.mxu1 %v1191_v62  ;;  %v620_v58 = vld [vmem:[#allocation12 + $0x70] sm:$0xff] }
 0x14a   :  { %1342 = vpow2.f32 %v1174_v6  ;;  %v1176_v12 = vmul.f32 -1.442695, %v554_v10  ;;  %958 = vmatpush1.bf16.msra.mxu0 %v1188_v60  ;;  %v1180_v10 = vcombine.low %v606_v2, %v610_v3  ;;  %v621_v60 = vld [vmem:[#allocation12 + $0x78] sm:$0xff] }
 0x14b   :  { %1344 = vpow2.f32 %v1175_v11  ;;  %v1315_v18 = vpop.f32.mrf.mxu1  ;;  %v1181_v11 = vcombine.high %v606_v2, %v610_v3  ;;  %1001 = vmatpush1.bf16.msra.mxu1 %v1190_v61  ;;  %v608_v2 = vld [vmem:[#allocation12 + $0x10] sm:$0xff] }
 0x14c   :  { %1346 = vpow2.f32 %v1176_v12  ;;  %v536_v31 = vadd.f32 %v1315_v18, %v383_v20  ;;  %v648_v12 = vld [vmem:[#allocation12 + $0x150] sm:$0xff]  ;;  %v653_v18 = vld [vmem:[#allocation12 + $0x178] sm:$0xff] }
 0x14d   :  { %v530_v22 = vpop.f32.mrf.mxu1  ;;  %959 = vmatprep.subr.bf16.mxu0 %v1181_v11  ;;  %v612_v3 = vld [vmem:[#allocation12 + $0x30] sm:$0xff] }
 0x14e   :  { %v531_v26 = vadd.f32 %v530_v22, %v383_v20  ;;  %960 = vmatpush1.bf16.msra.mxu0 %v1180_v10  ;;  %v1194_v10 = vcombine.low %v617_v59, %v621_v60  ;;  %v1185_v11 = vcombine.high %v608_v2, %v612_v3 }
 0x153   :  { %v1341_v0 = vpop.eup %1340 }
 0x154   :  { %v547_v14 = vadd.f32 1.0, %v1341_v0  ;;  %v652_v0 = vld [vmem:[#allocation12 + $0x170] sm:$0xff] }
 0x155   :  { %v1224_v20 = vcombine.low %v648_v12, %v652_v0 }
 0x156   :  { %1348 = vrcp.f32 %v547_v14 }
 0x157   :  { %v1343_v15 = vpop.eup %1342 }
 0x158   :  { %v548_v17 = vadd.f32 1.0, %v1343_v15  ;;  %v1345_v21 = vpop.eup %1344 }
 0x159   :  { %v1347_v23 = vpop.eup %1346  ;;  %v561_v24 = vadd.f32 1.0, %v1345_v21 }
 0x15a   :  { %1350 = vrcp.f32 %v548_v17  ;;  %v562_v28 = vadd.f32 1.0, %v1347_v23  ;;  %v649_v17 = vld [vmem:[#allocation12 + $0x158] sm:$0xff] }
 0x15b   :  { %1352 = vrcp.f32 %v561_v24  ;;  %v1226_v21 = vcombine.low %v649_v17, %v653_v18  ;;  %v1227_v23 = vcombine.high %v649_v17, %v653_v18 }
 0x15c   :  { %1354 = vrcp.f32 %v562_v28 }
 0x163   :  { %v1349_v27 = vpop.eup %1348 }
 0x164   :  { %v567_v30 = vmul.f32 %v1349_v27, %v531_v26 }
 0x166   :  { %v569_v32 = vadd.f32 %v567_v30, %v314_v29 }
 0x167   :  { %v1351_v34 = vpop.eup %1350 }
 0x168   :  { %v568_v36 = vmul.f32 %v1351_v34, %v536_v31  ;;  %1356 = vtanh.f32 %v569_v32  ;;  %v1353_v38 = vpop.eup %1352  ;;  %v640_v32 = vld [vmem:[#allocation12 + $0x110] sm:$0xff] }
 0x169   :  { %v1355_v49 = vpop.eup %1354  ;;  %v573_v51 = vsub.f32 1.0, %v1353_v38  ;;  %v577_v57 = vmul.f32 %v1353_v38, %v1639_v4  ;;  %v611_v4 = vld [vmem:[#allocation12 + $0x28] sm:$0xff]  ;;  %v644_v34 = vld [vmem:[#allocation12 + $0x130] sm:$0xff] }
 0x16a   :  { %v570_v37 = vadd.f32 %v568_v36, %v319_v35  ;;  %v574_v63 = vsub.f32 1.0, %v1355_v49  ;;  %v578_v8 = vmul.f32 %v1355_v49, %v1643_v7  ;;  %v1182_v14 = vcombine.low %v607_v5, %v611_v4  ;;  %v641_v35 = vld [vmem:[#allocation12 + $0x118] sm:$0xff]  ;;  %v628_v49 = vld [vmem:[#allocation12 + $0xb0] sm:$0xff] }
 0x16b   :  { %v1183_v15 = vcombine.high %v607_v5, %v611_v4  ;;  %v1225_v7 = vcombine.high %v648_v12, %v652_v0  ;;  %v645_v36 = vld [vmem:[#allocation12 + $0x138] sm:$0xff]  ;;  %v1217_v39 = vcombine.high %v640_v32, %v644_v34  ;;  %v1201_v55 = vcombine.high %v624_v48, %v628_v49 }
 0x16c   :  { %1358 = vtanh.f32 %v570_v37  ;;  %v632_v37 = vld [vmem:[#allocation12 + $0xd0] sm:$0xff]  ;;  %v1219_v40 = vcombine.high %v641_v35, %v645_v36  ;;  %v1218_v45 = vcombine.low %v641_v35, %v645_v36  ;;  %v1200_v61 = vcombine.low %v624_v48, %v628_v49  ;;  %v609_v5 = vld [vmem:[#allocation12 + $0x18] sm:$0xff] }
 0x16d   :  { %1002 = vmatprep.subr.bf16.mxu1 %v1183_v15  ;;  %1035 = vmatprep.subr.bf16.mxu0 %v1225_v7  ;;  %v1209_v46 = vcombine.high %v632_v37, %v636_v42  ;;  %v1208_v53 = vcombine.low %v632_v37, %v636_v42  ;;  %v1184_v12 = vcombine.low %v608_v2, %v612_v3 }
 0x16e   :  { %1003 = vmatpush1.bf16.msra.mxu1 %v1182_v14 }
 0x16f   :  { %1078 = vmatprep.subr.bf16.mxu1 %v1227_v23 }
 0x175   :  { %v1357_v52 = vpop.eup %1356 }
 0x176   :  { %v575_v56 = vmul.f32 %v1357_v52, %v573_v51  ;;  %v625_v51 = vld [vmem:[#allocation12 + $0x98] sm:$0xff] }
 0x177   :  { %v629_v52 = vld [vmem:[#allocation12 + $0xb8] sm:$0xff] }
 0x178   :  { %v579_v1 = vadd.f32 %v577_v57, %v575_v56  ;;  %v1203_v56 = vcombine.high %v625_v51, %v629_v52  ;;  %v616_v57 = vld [vmem:[#allocation12 + $0x50] sm:$0xff]  ;;  %v1202_v62 = vcombine.low %v625_v51, %v629_v52 }
 0x179   :  { %v1359_v6 = vpop.eup %1358 }
 0x17a   :  { %v576_v13 = vmul.f32 %v1359_v6, %v574_v63  ;;  %581 = vst [vmem:[#allocation15] sm:$0xff] %v579_v1  ;;  %v1193_v63 = vcombine.high %v616_v57, %v620_v58  ;;  %v613_v6 = vld [vmem:[#allocation12 + $0x38] sm:$0xff] }
 0x17b   :  { %v1187_v4 = vcombine.high %v609_v5, %v613_v6  ;;  %v1186_v0 = vcombine.low %v609_v5, %v613_v6 }
 0x17c   :  { %v580_v22 = vadd.f32 %v578_v8, %v576_v13  ;;  %v1192_v8 = vcombine.low %v616_v57, %v620_v58 }
 0x17e   :  { %v1334_v24 = vpack.i.bf16 %v580_v22, %v579_v1  ;;  %582 = vst [vmem:[#allocation15 + $0x8] sm:$0xff] %v580_v22  ;;  %v1195_v1 = vcombine.high %v617_v59, %v621_v60 }
 0x180   :  { %1335 = vrot.lane.b32.xlu0 %v1334_v24, %s1546_s4 }
 0x1f2   :  { %v1336_v25 = vpop.permute.xlu0 %1335 }
 0x1f3   :  { %v1338_v26 = vunpack.i.h.bf16 %v1336_v25  ;;  %v1337_v27 = vunpack.i.l.bf16 %v1336_v25 }
 0x1f5   :  { %v592_v28 = vsel %vm163_vm0, %v1632_v33, %v1338_v26  ;;  %v591_v29 = vsel %vm163_vm0, %v1625_v9, %v1337_v27  ;;  %v637_v33 = vld [vmem:[#allocation12 + $0xf8] sm:$0xff]  ;;  %v1216_v9 = vcombine.low %v640_v32, %v644_v34 }
 0x1f6   :  { %v1233_v30 = vpack.c.bf16 %v592_v28, %v592_v28  ;;  %v1232_v31 = vpack.c.bf16 %v591_v29, %v591_v29  ;;  %v1211_v47 = vcombine.high %v633_v44, %v637_v33  ;;  %v1210_v54 = vcombine.low %v633_v44, %v637_v33 }
 0x1f8   :  { %603 = vst.msk [vmem:[#allocation2 + $0x4] sm:$0xf] %vm601_vm1, %v1233_v30  ;;  %602 = vst.msk [vmem:[#allocation2] sm:$0xf] %vm601_vm1, %v1232_v31 }
 0x1ff   :  { %v1675_v38 = vld [vmem:[#allocation2] sm:$0xff]  }
 0x200   :  { %1228 = vmatmul.mubr.msk.bf16.vlgmr.msra.gmra.mxu0 %vm941_vm2, %v1675_v38  ;;  %1229 = vmatmul.mubr.msk.bf16.vlgmr.msra.gmra.mxu1 %vm941_vm2, %v1675_v38 }
 0x201   :  { %1036 = vmatpush1.bf16.msra.mxu0 %v1224_v20  ;;  %1079 = vmatpush1.bf16.msra.mxu1 %v1226_v21 }
 0x202   :  { %1037 = vmatprep.subr.bf16.mxu0 %v1217_v39  ;;  %1080 = vmatprep.subr.bf16.mxu1 %v1219_v40 }
 0x203   :  { %1063 = vmatprep.mubr.bf16.mxu0 %v1545_v16  ;;  %1106 = vmatprep.mubr.bf16.mxu1 %v1545_v16 }
 0x205   :  { %1038 = vmatpush1.bf16.msra.mxu0 %v1216_v9  ;;  %1081 = vmatpush1.bf16.msra.mxu1 %v1218_v45 }
 0x206   :  { %1039 = vmatprep.subr.bf16.mxu0 %v1209_v46  ;;  %1082 = vmatprep.subr.bf16.mxu1 %v1211_v47 }
 0x209   :  { %1040 = vmatpush1.bf16.msra.mxu0 %v1208_v53  ;;  %1083 = vmatpush1.bf16.msra.mxu1 %v1210_v54 }
 0x20a   :  { %1041 = vmatprep.subr.bf16.mxu0 %v1201_v55  ;;  %1084 = vmatprep.subr.bf16.mxu1 %v1203_v56 }
 0x20d   :  { %1042 = vmatpush1.bf16.msra.mxu0 %v1200_v61  ;;  %1085 = vmatpush1.bf16.msra.mxu1 %v1202_v62 }
 0x20e   :  { %1043 = vmatprep.subr.bf16.mxu0 %v1193_v63  ;;  %1086 = vmatprep.subr.bf16.mxu1 %v1195_v1 }
 0x211   :  { %1044 = vmatpush1.bf16.msra.mxu0 %v1192_v8  ;;  %1087 = vmatpush1.bf16.msra.mxu1 %v1194_v10 }
 0x212   :  { %1045 = vmatprep.subr.bf16.mxu0 %v1185_v11  ;;  %1088 = vmatprep.subr.bf16.mxu1 %v1187_v4 }
 0x215   :  { %1046 = vmatpush1.bf16.msra.mxu0 %v1184_v12  ;;  %1089 = vmatpush1.bf16.msra.mxu1 %v1186_v0 }
 0x218   :  { %1230 = vmatmul.mubr.msk.bf16.vlgmr.msra.gmra.mxu0 %vm941_vm2, %v1675_v38  ;;  %1231 = vmatmul.mubr.msk.bf16.vlgmr.msra.gmra.mxu1 %vm941_vm2, %v1675_v38 }
 0x219   :  { %1491 = shalt.err (!%p1488_p6)
}
 0x21a   :  { %1156 = dma.vmem_to_hbm [thread:$0]  %s1151_s24, 256, %s1715_s9, [#allocation16], %s1533_s12, %s1533_s12, %s1534_s13   ;;  %v670_v14 = vsub.s32 3, %v1648_v41  ;;  %v674_v32 = vsub.s32 4, %v1648_v41  ;;  %v682_v34 = vsub.s32 6, %v1648_v41  ;;  %v678_v35 = vsub.s32 5, %v1648_v41 }
 0x21b   :  { %v654_v13 = vld [vmem:[%s1713_s7] sm:$0xff]  ;;  %v686_v36 = vsub.s32 7, %v1648_v41  ;;  %s1548_s7 = smov [#allocation14]  }
 0x21c   :  { %v659_v15 = vrot.slane %v654_v13, %v1651_v43  ;;  %v667_v16 = vrot.slane %v654_v13, %v1664_v19  ;;  %v663_v17 = vrot.slane %v654_v13, %v1659_v50  ;;  %v671_v18 = vrot.slane %v654_v13, %v670_v14  ;;  %s1138_s9 = sshll.u32 %s1548_s7, 4  ;;  %s1139_s9 = int_to_ptr.vmem [resolvable:$true] %s1138_s9 }
 0x21d   :  { %v675_v37 = vrot.slane %v654_v13, %v674_v32  ;;  %v683_v38 = vrot.slane %v654_v13, %v682_v34  ;;  %v679_v39 = vrot.slane %v654_v13, %v678_v35  ;;  %v687_v40 = vrot.slane %v654_v13, %v686_v36  ;;  %s1500_s12 = scalar_lea.vmem %s1139_s9, 2048  ;;  %p1505_p8 = scmp.lt.s32.totalorder %s1139_s9, %s1139_s9 }
 0x21e   :  { %p1501_p7 = scmp.ne.s32.totalorder %s1139_s9, %s1500_s12  ;;  %p1506_p9 = scmp.lt.s32.totalorder %s1500_s12, %s1500_s12 }
 0x220   :  { %p1507_p10 = por %p1506_p9, %p1505_p8 }
 0x222   :  { %p1508_p11 = pnand %p1507_p10, %p1501_p7 }
 0x2c0   :  { %v979_v20 = vpop.f32.mrf.mxu0  ;;  %v1022_v7 = vpop.f32.mrf.mxu1 }
 0x2c1   :  { %v980_v21 = vadd.f32 %v979_v20, %v659_v15  ;;  %v1023_v22 = vadd.f32 %v1022_v7, %v667_v16 }
 0x2c2   :  { %v981_v23 = vpop.f32.mrf.mxu0  ;;  %v1024_v24 = vpop.f32.mrf.mxu1 }
 0x2c3   :  { %1117 = vst [vmem:[#allocation14] sm:$0xff] %v980_v21  ;;  %1119 = vst [vmem:[#allocation14 + $0x10] sm:$0xff] %v1023_v22  ;;  %v982_v25 = vadd.f32 %v981_v23, %v663_v17  ;;  %v1025_v26 = vadd.f32 %v1024_v24, %v671_v18 }
 0x2c4   :  { %v983_v27 = vpop.f32.mrf.mxu0  ;;  %v1026_v28 = vpop.f32.mrf.mxu1 }
 0x2c5   :  { %1118 = vst [vmem:[#allocation14 + $0x8] sm:$0xff] %v982_v25  ;;  %1120 = vst [vmem:[#allocation14 + $0x18] sm:$0xff] %v1025_v26  ;;  %v984_v43 = vadd.f32 %v983_v27, %v659_v15  ;;  %v1027_v29 = vadd.f32 %v1026_v28, %v667_v16 }
 0x2c6   :  { %v985_v19 = vpop.f32.mrf.mxu0  ;;  %v1028_v30 = vpop.f32.mrf.mxu1 }
 0x2c7   :  { %1125 = vst [vmem:[#allocation14 + $0x40] sm:$0xff] %v984_v43  ;;  %1127 = vst [vmem:[#allocation14 + $0x50] sm:$0xff] %v1027_v29  ;;  %v986_v50 = vadd.f32 %v985_v19, %v663_v17  ;;  %v1029_v31 = vadd.f32 %v1028_v30, %v671_v18 }
 0x2c9   :  { %1126 = vst [vmem:[#allocation14 + $0x48] sm:$0xff] %v986_v50  ;;  %1128 = vst [vmem:[#allocation14 + $0x58] sm:$0xff] %v1029_v31 }
 0x2d8   :  { %v1065_v42 = vpop.f32.mrf.mxu0  ;;  %v1108_v44 = vpop.f32.mrf.mxu1 }
 0x2d9   :  { %v1066_v33 = vadd.f32 %v1065_v42, %v675_v37  ;;  %v1109_v9 = vadd.f32 %v1108_v44, %v683_v38 }
 0x2da   :  { %v1067_v45 = vpop.f32.mrf.mxu0  ;;  %v1110_v46 = vpop.f32.mrf.mxu1 }
 0x2db   :  { %1121 = vst [vmem:[#allocation14 + $0x20] sm:$0xff] %v1066_v33  ;;  %1123 = vst [vmem:[#allocation14 + $0x30] sm:$0xff] %v1109_v9  ;;  %v1068_v47 = vadd.f32 %v1067_v45, %v679_v39  ;;  %v1111_v48 = vadd.f32 %v1110_v46, %v687_v40 }
 0x2dc   :  { %v1069_v49 = vpop.f32.mrf.mxu0  ;;  %v1112_v51 = vpop.f32.mrf.mxu1 }
 0x2dd   :  { %1122 = vst [vmem:[#allocation14 + $0x28] sm:$0xff] %v1068_v47  ;;  %1124 = vst [vmem:[#allocation14 + $0x38] sm:$0xff] %v1111_v48  ;;  %v1070_v41 = vadd.f32 %v1069_v49, %v675_v37  ;;  %v1113_v52 = vadd.f32 %v1112_v51, %v683_v38 }
 0x2de   :  { %v1071_v53 = vpop.f32.mrf.mxu0  ;;  %v1114_v54 = vpop.f32.mrf.mxu1 }
 0x2df   :  { %1129 = vst [vmem:[#allocation14 + $0x60] sm:$0xff] %v1070_v41  ;;  %1131 = vst [vmem:[#allocation14 + $0x70] sm:$0xff] %v1113_v52  ;;  %v1072_v55 = vadd.f32 %v1071_v53, %v679_v39  ;;  %v1115_v56 = vadd.f32 %v1114_v54, %v687_v40 }
 0x2e1   :  { %1130 = vst [vmem:[#allocation14 + $0x68] sm:$0xff] %v1072_v55  ;;  %1132 = vst [vmem:[#allocation14 + $0x78] sm:$0xff] %v1115_v56 }
 0x2e2   :  { %1511 = shalt.err (!%p1508_p11)
}
 0x2e3   :  { %s1549_s13 = smov 1024  }
 0x2e4   :  { %1144 = dma.vmem_to_hbm [thread:$0]  %s1139_s9, 2048, %s1714_s8, [#allocation5], %s1549_s13, %s1549_s13, %s1546_s4  }
 0x2e5   :  { %1528 = dma.done.wait [#allocation5], 2048  }
 0x2e6   :  { %1529 = vsyncadd [#allocation5], 4294965248 }
 0x2e7   :  { %1530 = dma.done.wait [#allocation16], 256  }
 0x2e8   :  { %1531 = vsyncadd [#allocation16], 4294967040 }
 0x2e9   :  { %1163 = vsyncpa [#allocation4], 1 }
 0x2ea   :  { %1164 = vsyncpa [#allocation7], 1 }
 0x2eb   :  { %1165 = vsyncpa [#allocation10], 1 }
 0x2ec   :  { %1166 = vsyncpa [#allocation13], 1 }
 0x2ed   :  { %1167 = vsyncpa [#allocation5], 1 }
 0x2ee   :  { %1168 = vsyncpa [#allocation16], 1 }

</bundles_post_ra>
